<compile_context>
chip_gen: v7x
topology: tpu7x:2x2x1
jax: 0.10.0
libtpu: 0.0.40
codegen_flags: <defaults>
</compile_context>

<pallas_src>
import functools

import jax
import jax.numpy as jnp
from jax import lax
from jax.experimental import pallas as pl
from jax.experimental.pallas import tpu as pltpu


_LANE = 128
_SUBLANE = 8


def _dice_focal_partial_kernel(x_ref, t_ref, out_ref, *,
                               block_rows, sub_rows, blocks_per_split,
                               full_block_limit, main_rows, need_mask):
    s = pl.program_id(0)            # split (parallel; a TensorCore on v7x)
    j = pl.program_id(1)            # block within split (sequential reduction)
    g = s * blocks_per_split + j    # global block index

    @pl.when(j == 0)
    def _():
        out_ref[...] = jnp.zeros_like(out_ref)

    n_sub = block_rows // sub_rows

    def fold(v):
        # (sub_rows, 128) -> (8, 128): vreg-aligned elementwise adds only.
        return jnp.sum(v.reshape(sub_rows // _SUBLANE, _SUBLANE, _LANE), axis=0)

    def accumulate(x, t):
        # Stable sigmoid + BCE-with-logits sharing one exp and one log1p.
        # clip(x, -100, 100) reproduces PyTorch's F.binary_cross_entropy
        # log clamp at -100, and makes the masked fill value (-100) contribute
        # ~4e-44 per element (i.e. nothing) to every partial sum.
        xc = jnp.clip(x, -100.0, 100.0)
        e = jnp.exp(-jnp.abs(xc))
        p = jnp.where(xc >= 0.0, 1.0, e) / (1.0 + e)
        bce = jnp.maximum(xc, 0.0) - t * xc + jnp.log1p(e)
        out_ref[0] += fold(p * t)    # sum(p * t)
        out_ref[1] += fold(p)        # sum(p)
        out_ref[2] += fold(t)        # sum(t)
        out_ref[3] += fold(bce)      # sum(per-element BCE)

    def fast_chunk(c, carry):
        r0 = pl.multiple_of(c * sub_rows, sub_rows)
        accumulate(x_ref[pl.ds(r0, sub_rows), :].astype(jnp.float32),
                   t_ref[pl.ds(r0, sub_rows), :].astype(jnp.float32))
        return carry

    def masked_chunk(c, carry):
        r0 = pl.multiple_of(c * sub_rows, sub_rows)
        row = lax.broadcasted_iota(jnp.int32, (sub_rows, _LANE), 0)
        # Compare global *rows* against main_rows: no int32 overflow until
        # ~2^31 rows (~2^38 elements).
        grow = g * block_rows + c * sub_rows + row
        valid = grow < main_rows
        x = jnp.where(valid, x_ref[pl.ds(r0, sub_rows), :].astype(jnp.float32),
                      -100.0)
        t = jnp.where(valid, t_ref[pl.ds(r0, sub_rows), :].astype(jnp.float32),
                      0.0)
        accumulate(x, t)
        return carry

    if need_mask:
        @pl.when(g < full_block_limit)
        def _():
            lax.fori_loop(0, n_sub, fast_chunk, 0)

        @pl.when(g >= full_block_limit)
        def _():
            lax.fori_loop(0, n_sub, masked_chunk, 0)
    else:
        lax.fori_loop(0, n_sub, fast_chunk, 0)


def _partial_sums_jax(x, t):
    """[sum(p*t), sum(p), sum(t), sum(bce)] in plain JAX (tiny tails only)."""
    x = x.astype(jnp.float32)
    t = t.astype(jnp.float32)
    xc = jnp.clip(x, -100.0, 100.0)
    e = jnp.exp(-jnp.abs(xc))
    p = jnp.where(xc >= 0.0, 1.0, e) / (1.0 + e)
    bce = jnp.maximum(xc, 0.0) - t * xc + jnp.log1p(e)
    return jnp.stack([jnp.sum(p * t), jnp.sum(p), jnp.sum(t), jnp.sum(bce)])


def dice_focal_loss(logits, targets, smooth=1.0, alpha=0.5, gamma=2,
                    block_rows=4096):
    """Equivalent of DiceFocalLoss().forward(logits, targets)."""
    x = jnp.reshape(logits, (-1,))
    t = jnp.reshape(targets, (-1,))
    if t.dtype == jnp.bool_:
        t = t.astype(jnp.int8)      # keep HBM traffic low; kernel casts to f32
    n = int(x.shape[0])

    # The kernel handles a prefix of main_rows (multiple of 8) lane-rows; the
    # < 1024-element tail is reduced in plain JAX.  No full-array padding.
    main_rows = (n // (_SUBLANE * _LANE)) * _SUBLANE
    n_main = main_rows * _LANE

    totals = jnp.zeros((4,), jnp.float32)

    if main_rows > 0:
        x2 = (x if n_main == n else x[:n_main]).reshape(main_rows, _LANE)
        t2 = (t if n_main == n else t[:n_main]).reshape(main_rows, _LANE)

        block_rows_eff = int(min(max(8, (int(block_rows) // 8) * 8), main_rows))
        sub_rows = _SUBLANE
        for cand in (128, 64, 32, 16):
            if block_rows_eff % cand == 0:
                sub_rows = cand
                break

        num_blocks = pl.cdiv(main_rows, block_rows_eff)
        # Leading "parallel" axis: each v7x TensorCore reduces its half into
        # its own (4, 8, 128) partial block; harmless on 1-core v5e/v6e.
        num_splits = 2 if num_blocks >= 2 else 1
        bps = pl.cdiv(num_blocks, num_splits)
        full_block_limit = main_rows // block_rows_eff
        need_mask = (num_splits * bps * block_rows_eff != main_rows)
        grid_padded = (num_splits * bps > num_blocks)

        if grid_padded:
            def in_map(s_idx, j_idx):
                # Padded grid entries re-read the last real block; the kernel
                # masks all of their rows out.
                return (jnp.minimum(s_idx * bps + j_idx, num_blocks - 1), 0)
        else:
            def in_map(s_idx, j_idx):
                return (s_idx * bps + j_idx, 0)

        kernel = functools.partial(
            _dice_focal_partial_kernel,
            block_rows=block_rows_eff, sub_rows=sub_rows,
            blocks_per_split=bps, full_block_limit=full_block_limit,
            main_rows=main_rows, need_mask=need_mask)

        in_spec = pl.BlockSpec((block_rows_eff, _LANE), in_map)
        out_spec = pl.BlockSpec((4, _SUBLANE, _LANE),
                                lambda s_idx, j_idx: (s_idx, 0, 0))

        # 2 inputs x 2 pipeline buffers + generous headroom for sub-chunk
        # temporaries; capped so it also fits v7x's per-core VMEM budget.
        vmem_limit = int(min(
            48 * 1024 * 1024,
            2 * block_rows_eff * _LANE * (x2.dtype.itemsize + t2.dtype.itemsize)
            + (16 << 20)))

        partial = pl.pallas_call(
            kernel,
            out_shape=jax.ShapeDtypeStruct((num_splits * 4, _SUBLANE, _LANE),
                                           jnp.float32),
            grid_spec=pltpu.PrefetchScalarGridSpec(
                num_scalar_prefetch=0,
                grid=(num_splits, bps),
                in_specs=[in_spec, in_spec],
                out_specs=out_spec),
            compiler_params=pltpu.CompilerParams(
                dimension_semantics=("parallel", "arbitrary"),
                vmem_limit_bytes=vmem_limit),
        )(x2, t2)

        totals = totals + partial.reshape(num_splits, 4,
                                          _SUBLANE * _LANE).sum(axis=(0, 2))

    if n_main != n:
        totals = totals + _partial_sums_jax(x[n_main:], t[n_main:])

    # Tiny scalar epilogue in plain JAX (combines the per-split partials).
    intersection, sum_p, sum_t, bce_sum = (totals[0], totals[1],
                                           totals[2], totals[3])
    bce_mean = bce_sum / n
    dice = 1.0 - (2.0 * intersection + smooth) / (sum_p + sum_t + smooth)
    one_m = 1.0 - jnp.exp(-bce_mean)
    pw = one_m * one_m if float(gamma) == 2.0 else one_m ** gamma
    focal = alpha * pw * bce_mean
    return focal * 0.8 + dice * 0.2


def _reference(logits, targets, smooth=1.0, alpha=0.5, gamma=2):
    p = jax.nn.sigmoid(logits.reshape(-1).astype(jnp.float32))
    t = targets.reshape(-1).astype(jnp.float32)
    inter = jnp.sum(p * t)
    dice = 1.0 - (2.0 * inter + smooth) / (jnp.sum(p) + jnp.sum(t) + smooth)
    log_p = jnp.maximum(jnp.log(p), -100.0)
    log_1mp = jnp.maximum(jnp.log1p(-p), -100.0)
    bce = jnp.mean(-(t * log_p + (1.0 - t) * log_1mp))
    focal = alpha * (1.0 - jnp.exp(-bce)) ** gamma * bce
    return focal * 0.8 + dice * 0.2


if __name__ == "__main__":
    key = jax.random.PRNGKey(0)
    k1, k2 = jax.random.split(key)

    # 1) NCHW logits / binary targets, flat size a multiple of 1024
    #    (no slicing, single fast-path block).
    logits = jax.random.normal(k1, (2, 4, 16, 16), dtype=jnp.float32)
    targets = (jax.random.uniform(k2, (2, 4, 16, 16)) > 0.5).astype(jnp.float32)
    loss = jax.block_until_ready(dice_focal_loss(logits, targets))
    ref = _reference(logits, targets)
    assert jnp.allclose(loss, ref, atol=1e-5, rtol=1e-4), (loss, ref)

    # 2) Ragged small case: kernel handles the aligned prefix, JAX handles the
    #    <1024-element tail.
    k3, k4 = jax.random.split(k1)
    logits2 = jax.random.normal(k3, (2, 3, 15, 17), dtype=jnp.float32)
    targets2 = (jax.random.uniform(k4, (2, 3, 15, 17)) > 0.5).astype(jnp.float32)
    loss2 = jax.block_until_ready(dice_focal_loss(logits2, targets2))
    ref2 = _reference(logits2, targets2)
    assert jnp.allclose(loss2, ref2, atol=1e-5, rtol=1e-4), (loss2, ref2)

    # 3) Exercises every kernel path: 2-way parallel split, inner sub-chunk
    #    loop, partial (overhanging) last block, padded grid entry with a
    #    clamped index_map, and the JAX tail reduction.
    k5, k6 = jax.random.split(k2)
    logits3 = 3.0 * jax.random.normal(k5, (2, 2, 96, 129), dtype=jnp.float32)
    targets3 = (jax.random.uniform(k6, (2, 2, 96, 129)) > 0.5).astype(jnp.float32)
    loss3 = jax.block_until_ready(dice_focal_loss(logits3, targets3,
                                                  block_rows=80))
    ref3 = _reference(logits3, targets3)
    assert jnp.allclose(loss3, ref3, atol=1e-5, rtol=1e-4), (loss3, ref3)

    print("KERNEL_OK")
</pallas_src>

<mosaic_0001>
module attributes {stable_mosaic.version = 11 : i64} {
  func.func @_dice_focal_partial_kernel(%arg0: i32, %arg1: i32, %arg2: memref<16x128xf32, #tpu.memory_space<vmem>>, %arg3: memref<16x128xf32, #tpu.memory_space<vmem>>, %arg4: memref<4x8x128xf32, #tpu.memory_space<vmem>>) attributes {dimension_semantics = [#tpu.dimension_semantics<parallel>, #tpu.dimension_semantics<arbitrary>], iteration_bounds = array<i64: 1, 1>, scalar_prefetch = 0 : i64, scratch_operands = 0 : i64, tpu.core_type = #tpu.core_type<tc>, window_params = [{transform_indices = @transform_0, window_bounds = array<i64: 16, 128>}, {transform_indices = @transform_1, window_bounds = array<i64: 16, 128>}, {transform_indices = @transform_2, window_bounds = array<i64: 4, 8, 128>}]} {
    %c0_i32 = arith.constant 0 : i32
    %0 = arith.cmpi eq, %arg1, %c0_i32 : i32
    %1 = arith.extui %0 : i1 to i32
    %c0_i32_0 = arith.constant 0 : i32
    %2 = arith.cmpi ne, %1, %c0_i32_0 : i32
    scf.if %2 {
      %cst_34 = arith.constant 0.000000e+00 : f32
      %63 = vector.broadcast %cst_34 : f32 to vector<4x8x128xf32>
      %c0_35 = arith.constant 0 : index
      %c0_36 = arith.constant 0 : index
      %c0_37 = arith.constant 0 : index
      %64 = vector.load %arg4[%c0_35, %c0_36, %c0_37] : memref<4x8x128xf32, #tpu.memory_space<vmem>>, vector<4x8x128xf32>
      tpu.vector_store %arg4[%c0_35, %c0_36, %c0_37], %63 {strides = array<i32>} : memref<4x8x128xf32, #tpu.memory_space<vmem>>, vector<4x8x128xf32>,
    } else {
    }
    %c0_i32_1 = arith.constant 0 : i32
    %c16_i32 = arith.constant 16 : i32
    %3 = arith.muli %c0_i32_1, %c16_i32 : i32
    %4 = tpu.assume_multiple %3, 16 : i32
    %5 = arith.index_cast %4 : i32 to index
    %c0 = arith.constant 0 : index
    %6 = vector.load %arg2[%5, %c0] : memref<16x128xf32, #tpu.memory_space<vmem>>, vector<16x128xf32>
    %7 = arith.index_cast %4 : i32 to index
    %c0_2 = arith.constant 0 : index
    %8 = vector.load %arg3[%7, %c0_2] : memref<16x128xf32, #tpu.memory_space<vmem>>, vector<16x128xf32>
    %cst = arith.constant -1.000000e+02 : f32
    %cst_3 = arith.constant 1.000000e+02 : f32
    %9 = vector.broadcast %cst : f32 to vector<16x128xf32>
    %10 = arith.maximumf %9, %6 : vector<16x128xf32>
    %11 = vector.broadcast %cst_3 : f32 to vector<16x128xf32>
    %12 = arith.minimumf %11, %10 : vector<16x128xf32>
    %13 = math.absf %12 : vector<16x128xf32>
    %cst_4 = arith.constant 0.000000e+00 : f32
    %14 = vector.broadcast %cst_4 : f32 to vector<16x128xf32>
    %15 = arith.subf %14, %13 : vector<16x128xf32>
    %16 = math.exp %15 : vector<16x128xf32>
    %cst_5 = arith.constant 0.000000e+00 : f32
    %17 = vector.broadcast %cst_5 : f32 to vector<16x128xf32>
    %18 = arith.cmpf oge, %12, %17 : vector<16x128xf32>
    %cst_6 = arith.constant 1.000000e+00 : f32
    %19 = vector.broadcast %cst_6 : f32 to vector<16x128xf32>
    %20 = arith.select %18, %19, %16 : vector<16x128xi1>, vector<16x128xf32>
    %cst_7 = arith.constant 1.000000e+00 : f32
    %21 = vector.broadcast %cst_7 : f32 to vector<16x128xf32>
    %22 = arith.addf %21, %16 : vector<16x128xf32>
    %23 = arith.divf %20, %22 : vector<16x128xf32>
    %cst_8 = arith.constant 0.000000e+00 : f32
    %24 = vector.broadcast %cst_8 : f32 to vector<16x128xf32>
    %25 = arith.maximumf %12, %24 : vector<16x128xf32>
    %26 = arith.mulf %8, %12 : vector<16x128xf32>
    %27 = arith.subf %25, %26 : vector<16x128xf32>
    %28 = math.log1p %16 : vector<16x128xf32>
    %29 = arith.addf %27, %28 : vector<16x128xf32>
    %c0_9 = arith.constant 0 : index
    %c0_10 = arith.constant 0 : index
    %c0_11 = arith.constant 0 : index
    %30 = vector.load %arg4[%c0_9, %c0_10, %c0_11] : memref<4x8x128xf32, #tpu.memory_space<vmem>>, vector<1x8x128xf32>
    %31 = vector.shape_cast %30 : vector<1x8x128xf32> to vector<8x128xf32>
    %32 = arith.mulf %23, %8 : vector<16x128xf32>
    %33 = vector.shape_cast %32 : vector<16x128xf32> to vector<2x8x128xf32>
    %cst_12 = arith.constant dense<0.000000e+00> : vector<8x128xf32>
    %34 = vector.multi_reduction <add>, %33, %cst_12 [0] : vector<2x8x128xf32> to vector<8x128xf32>
    %35 = arith.addf %31, %34 : vector<8x128xf32>
    %c0_13 = arith.constant 0 : index
    %c0_14 = arith.constant 0 : index
    %c0_15 = arith.constant 0 : index
    %36 = vector.load %arg4[%c0_13, %c0_14, %c0_15] : memref<4x8x128xf32, #tpu.memory_space<vmem>>, vector<1x8x128xf32>
    %37 = vector.shape_cast %36 : vector<1x8x128xf32> to vector<8x128xf32>
    %38 = vector.shape_cast %35 : vector<8x128xf32> to vector<1x8x128xf32>
    tpu.vector_store %arg4[%c0_13, %c0_14, %c0_15], %38 {strides = array<i32>} : memref<4x8x128xf32, #tpu.memory_space<vmem>>, vector<1x8x128xf32>,
    %c1 = arith.constant 1 : index
    %c0_16 = arith.constant 0 : index
    %c0_17 = arith.constant 0 : index
    %39 = vector.load %arg4[%c1, %c0_16, %c0_17] : memref<4x8x128xf32, #tpu.memory_space<vmem>>, vector<1x8x128xf32>
    %40 = vector.shape_cast %39 : vector<1x8x128xf32> to vector<8x128xf32>
    %41 = vector.shape_cast %23 : vector<16x128xf32> to vector<2x8x128xf32>
    %cst_18 = arith.constant dense<0.000000e+00> : vector<8x128xf32>
    %42 = vector.multi_reduction <add>, %41, %cst_18 [0] : vector<2x8x128xf32> to vector<8x128xf32>
    %43 = arith.addf %40, %42 : vector<8x128xf32>
    %c1_19 = arith.constant 1 : index
    %c0_20 = arith.constant 0 : index
    %c0_21 = arith.constant 0 : index
    %44 = vector.load %arg4[%c1_19, %c0_20, %c0_21] : memref<4x8x128xf32, #tpu.memory_space<vmem>>, vector<1x8x128xf32>
    %45 = vector.shape_cast %44 : vector<1x8x128xf32> to vector<8x128xf32>
    %46 = vector.shape_cast %43 : vector<8x128xf32> to vector<1x8x128xf32>
    tpu.vector_store %arg4[%c1_19, %c0_20, %c0_21], %46 {strides = array<i32>} : memref<4x8x128xf32, #tpu.memory_space<vmem>>, vector<1x8x128xf32>,
    %c2 = arith.constant 2 : index
    %c0_22 = arith.constant 0 : index
    %c0_23 = arith.constant 0 : index
    %47 = vector.load %arg4[%c2, %c0_22, %c0_23] : memref<4x8x128xf32, #tpu.memory_space<vmem>>, vector<1x8x128xf32>
    %48 = vector.shape_cast %47 : vector<1x8x128xf32> to vector<8x128xf32>
    %49 = vector.shape_cast %8 : vector<16x128xf32> to vector<2x8x128xf32>
    %cst_24 = arith.constant dense<0.000000e+00> : vector<8x128xf32>
    %50 = vector.multi_reduction <add>, %49, %cst_24 [0] : vector<2x8x128xf32> to vector<8x128xf32>
    %51 = arith.addf %48, %50 : vector<8x128xf32>
    %c2_25 = arith.constant 2 : index
    %c0_26 = arith.constant 0 : index
    %c0_27 = arith.constant 0 : index
    %52 = vector.load %arg4[%c2_25, %c0_26, %c0_27] : memref<4x8x128xf32, #tpu.memory_space<vmem>>, vector<1x8x128xf32>
    %53 = vector.shape_cast %52 : vector<1x8x128xf32> to vector<8x128xf32>
    %54 = vector.shape_cast %51 : vector<8x128xf32> to vector<1x8x128xf32>
    tpu.vector_store %arg4[%c2_25, %c0_26, %c0_27], %54 {strides = array<i32>} : memref<4x8x128xf32, #tpu.memory_space<vmem>>, vector<1x8x128xf32>,
    %c3 = arith.constant 3 : index
    %c0_28 = arith.constant 0 : index
    %c0_29 = arith.constant 0 : index
    %55 = vector.load %arg4[%c3, %c0_28, %c0_29] : memref<4x8x128xf32, #tpu.memory_space<vmem>>, vector<1x8x128xf32>
    %56 = vector.shape_cast %55 : vector<1x8x128xf32> to vector<8x128xf32>
    %57 = vector.shape_cast %29 : vector<16x128xf32> to vector<2x8x128xf32>
    %cst_30 = arith.constant dense<0.000000e+00> : vector<8x128xf32>
    %58 = vector.multi_reduction <add>, %57, %cst_30 [0] : vector<2x8x128xf32> to vector<8x128xf32>
    %59 = arith.addf %56, %58 : vector<8x128xf32>
    %c3_31 = arith.constant 3 : index
    %c0_32 = arith.constant 0 : index
    %c0_33 = arith.constant 0 : index
    %60 = vector.load %arg4[%c3_31, %c0_32, %c0_33] : memref<4x8x128xf32, #tpu.memory_space<vmem>>, vector<1x8x128xf32>
    %61 = vector.shape_cast %60 : vector<1x8x128xf32> to vector<8x128xf32>
    %62 = vector.shape_cast %59 : vector<8x128xf32> to vector<1x8x128xf32>
    tpu.vector_store %arg4[%c3_31, %c0_32, %c0_33], %62 {strides = array<i32>} : memref<4x8x128xf32, #tpu.memory_space<vmem>>, vector<1x8x128xf32>,
    %c1_i32 = arith.constant 1 : i32
    return
  }
  func.func @transform_0(%arg0: i32, %arg1: i32) -> (i32, i32) {
    %c1_i32 = arith.constant 1 : i32
    %0 = arith.muli %arg0, %c1_i32 : i32
    %1 = arith.addi %0, %arg1 : i32
    %c0_i32 = arith.constant 0 : i32
    %c0_i32_0 = arith.constant 0 : i32
    return %1, %c0_i32 : i32, i32
  }
  func.func @transform_1(%arg0: i32, %arg1: i32) -> (i32, i32) {
    %c1_i32 = arith.constant 1 : i32
    %0 = arith.muli %arg0, %c1_i32 : i32
    %1 = arith.addi %0, %arg1 : i32
    %c0_i32 = arith.constant 0 : i32
    %c0_i32_0 = arith.constant 0 : i32
    return %1, %c0_i32 : i32, i32
  }
  func.func @transform_2(%arg0: i32, %arg1: i32) -> (i32, i32, i32) {
    %c0_i32 = arith.constant 0 : i32
    %c0_i32_0 = arith.constant 0 : i32
    %c0_i32_1 = arith.constant 0 : i32
    return %arg0, %c0_i32, %c0_i32_0 : i32, i32, i32
  }
}

</mosaic_0001>

<bundles_post_ra>
// kernel: tpu_custom_call.1
= control target key start
LH: loop header
LB: loop body
LE: loop exit
PB: predicated region body
PF: predicated region fallthrough
CT: control target
= control target key end

     0   :  { %7 = vsyncpa [#allocation3], 0  ;;  %s308_s0 = inlined_call_operand.hbm [shape: f32[16,128], index: 0, kind: input, shape index: {}]   ;;  %s309_s1 = inlined_call_operand.hbm [shape: f32[16,128], index: 1, kind: input, shape index: {}]   ;;  %s310_s2 = inlined_call_operand.hbm [shape: f32[4,8,128], index: 2, kind: output, shape index: {}]  }
   0x1   :  { %8 = vsyncpa [#allocation6], 0 }
   0x2   :  { %9 = vsyncpa [#allocation4], 0  ;;  %s243_s9 = smov [#allocation2]   ;;  %s171_s13 = scalar_lea.hbm %s308_s0, 256 }
   0x3   :  { %s19_s10 = sshll.u32 %s243_s9, 4  ;;  %p172_p0 = scmp.ne.s32.totalorder %s308_s0, %s171_s13  ;;  %s20_s10 = int_to_ptr.vmem [resolvable:$true] %s19_s10 }
   0x4   :  { %p175_p1 = scmp.lt.u32.totalorder %s171_s13, %s308_s0 }
   0x6   :  { %p177_p2 = pnand %p175_p1, %p172_p0 }
   0x8   :  { %180 = shalt.err (!%p177_p2)
}
   0x9   :  { %s181_s18 = scalar_lea.vmem %s20_s10, 256  ;;  %p186_p4 = scmp.lt.s32.totalorder %s20_s10, %s20_s10 }
   0xa   :  { %p182_p3 = scmp.ne.s32.totalorder %s20_s10, %s181_s18  ;;  %p187_p5 = scmp.lt.s32.totalorder %s181_s18, %s181_s18 }
   0xc   :  { %p188_p6 = por %p187_p5, %p186_p4 }
   0xe   :  { %p189_p7 = pnand %p188_p6, %p182_p3 }
  0x10   :  { %192 = shalt.err (!%p189_p7)
}
  0x11   :  { %s244_s19 = smov 128   ;;  %s245_s20 = smov 8  }
  0x12   :  { %25 = dma.hbm_to_vmem [thread:$0]  %s308_s0, 256, %s20_s10, [#allocation3], %s244_s19, %s244_s19, %s245_s20  }
  0x13   :  { %s246_s23 = smov [#allocation5]   ;;  %s193_s27 = scalar_lea.hbm %s309_s1, 256 }
  0x14   :  { %s35_s24 = sshll.u32 %s246_s23, 4  ;;  %p194_p8 = scmp.ne.s32.totalorder %s309_s1, %s193_s27  ;;  %s36_s24 = int_to_ptr.vmem [resolvable:$true] %s35_s24 }
  0x15   :  { %p197_p9 = scmp.lt.u32.totalorder %s193_s27, %s309_s1 }
  0x17   :  { %p199_p10 = pnand %p197_p9, %p194_p8 }
  0x19   :  { %202 = shalt.err (!%p199_p10)
}
  0x1a   :  { %s203_s4 = scalar_lea.vmem %s36_s24, 256  ;;  %p208_p12 = scmp.lt.s32.totalorder %s36_s24, %s36_s24 }
  0x1b   :  { %p204_p11 = scmp.ne.s32.totalorder %s36_s24, %s203_s4  ;;  %p209_p13 = scmp.lt.s32.totalorder %s203_s4, %s203_s4 }
  0x1d   :  { %p210_p0 = por %p209_p13, %p208_p12 }
  0x1f   :  { %p211_p1 = pnand %p210_p0, %p204_p11 }
  0x21   :  { %214 = shalt.err (!%p211_p1)
}
  0x22   :  { %41 = dma.hbm_to_vmem [thread:$0]  %s309_s1, 256, %s36_s24, [#allocation6], %s244_s19, %s244_s19, %s245_s20  }
  0x23   :  { %237 = dma.done.wait [#allocation3], 256  }
  0x24   :  { %238 = vsyncadd [#allocation3], 4294967040 }
  0x25   :  { %239 = dma.done.wait [#allocation6], 256  }
  0x26   :  { %240 = vsyncadd [#allocation6], 4294967040  ;;  %v60_v0 = vld [vmem:[#allocation2] sm:$0xff]  ;;  %v61_v1 = vld [vmem:[#allocation2 + $0x8] sm:$0xff]  ;;  %s247_s1 = smov [#allocation7]  }
  0x27   :  { %v62_v2 = vld [vmem:[#allocation5] sm:$0xff]  ;;  %v63_v3 = vld [vmem:[#allocation5 + $0x8] sm:$0xff]  ;;  %v151_v4 = vclamps-f32 %v60_v0, 100.0  ;;  %v152_v5 = vclamps-f32 %v61_v1, 100.0  ;;  %s138_s6 = sshll.u32 %s247_s1, 4  ;;  %s139_s6 = int_to_ptr.vmem [resolvable:$true] %s138_s6 }
  0x28   :  { %v125_v6 = vadd.f32 %v63_v3, %v62_v2  ;;  %s215_s7 = scalar_lea.vmem %s139_s6, 512  ;;  %p220_p3 = scmp.lt.s32.totalorder %s139_s6, %s139_s6 }
  0x29   :  { %v68_v7 = vand.u32 2147483647, %v151_v4  ;;  %v69_v8 = vand.u32 2147483647, %v152_v5  ;;  %vm76_vm0 = vcmp.ge.f32.partialorder %v151_v4, 0.0  ;;  %vm77_vm1 = vcmp.ge.f32.partialorder %v152_v5, 0.0  ;;  %p216_p2 = scmp.ne.s32.totalorder %s139_s6, %s215_s7  ;;  %p221_p4 = scmp.lt.s32.totalorder %s215_s7, %s215_s7 }
  0x2a   :  { %127 = vst [vmem:[#allocation7 + $0x10] sm:$0xff] %v125_v6  ;;  %v86_v19 = vmax.f32 %v151_v4, 0.0  ;;  %v88_v22 = vmul.f32 %v151_v4, %v62_v2  ;;  %v87_v26 = vmax.f32 %v152_v5, 0.0  ;;  %v89_v27 = vmul.f32 %v152_v5, %v63_v3 }
  0x2b   :  { %v70_v9 = vsub.f32 0.0, %v68_v7  ;;  %v71_v10 = vsub.f32 0.0, %v69_v8  ;;  %p222_p5 = por %p221_p4, %p220_p3 }
  0x2c   :  { %v90_v35 = vsub.f32 %v86_v19, %v88_v22  ;;  %v91_v39 = vsub.f32 %v87_v26, %v89_v27 }
  0x2d   :  { %v72_v11 = vmul.f32 1.442695, %v70_v9  ;;  %v74_v12 = vmul.f32 1.442695, %v71_v10  ;;  %p223_p6 = pnand %p222_p5, %p216_p2 }
  0x2f   :  { %159 = vpow2.f32 %v72_v11 }
  0x30   :  { %161 = vpow2.f32 %v74_v12 }
  0x39   :  { %v160_v13 = vpop.eup %159 }
  0x3a   :  { %v162_v14 = vpop.eup %161  ;;  %v80_v15 = vadd.f32 1.0, %v160_v13  ;;  %v95_v17 = vmul.f32 -0.5, %v160_v13  ;;  %v78_v21 = vsel %vm76_vm0, 1.0, %v160_v13  ;;  %v98_v23 = vand.u32 2147483647, %v160_v13 }
  0x3b   :  { %v81_v16 = vadd.f32 1.0, %v162_v14  ;;  %v104_v18 = vmul.f32 -0.5, %v162_v14  ;;  %v79_v25 = vsel %vm77_vm1, 1.0, %v162_v14  ;;  %v107_v28 = vand.u32 2147483647, %v162_v14 }
  0x3c   :  { %163 = vrcp.f32 %v80_v15  ;;  %v96_v20 = vadd.f32 1.0, %v95_v17  ;;  %vm99_vm2 = vcmp.lt.f32.partialorder %v98_v23, 0.0004427343 }
  0x3d   :  { %165 = vrcp.f32 %v81_v16  ;;  %v105_v24 = vadd.f32 1.0, %v104_v18  ;;  %vm108_vm3 = vcmp.lt.f32.partialorder %v107_v28, 0.0004427343 }
  0x3e   :  { %167 = vlog2.f32 %v80_v15  ;;  %v97_v32 = vmul.f32 %v160_v13, %v96_v20 }
  0x3f   :  { %169 = vlog2.f32 %v81_v16  ;;  %v106_v36 = vmul.f32 %v162_v14, %v105_v24 }
  0x46   :  { %v164_v29 = vpop.eup %163 }
  0x47   :  { %v166_v30 = vpop.eup %165  ;;  %v83_v31 = vmul.f32 %v164_v29, %v78_v21 }
  0x48   :  { %v168_v33 = vpop.eup %167  ;;  %v85_v34 = vmul.f32 %v166_v30, %v79_v25 }
  0x49   :  { %v170_v37 = vpop.eup %169  ;;  %v113_v38 = vmul.f32 %v83_v31, %v62_v2  ;;  %v94_v40 = vmul.f32 0.6931472, %v168_v33 }
  0x4a   :  { %v114_v41 = vmul.f32 %v85_v34, %v63_v3  ;;  %v120_v42 = vadd.f32 %v85_v34, %v83_v31  ;;  %v103_v43 = vmul.f32 0.6931472, %v170_v37 }
  0x4b   :  { %v100_v44 = vsel %vm99_vm2, %v97_v32, %v94_v40 }
  0x4c   :  { %v115_v45 = vadd.f32 %v114_v41, %v113_v38  ;;  %v109_v46 = vsel %vm108_vm3, %v106_v36, %v103_v43  ;;  %v110_v47 = vadd.f32 %v100_v44, %v90_v35  ;;  %122 = vst [vmem:[#allocation7 + $0x8] sm:$0xff] %v120_v42 }
  0x4d   :  { %v111_v48 = vadd.f32 %v109_v46, %v91_v39 }
  0x4e   :  { %117 = vst [vmem:[#allocation7] sm:$0xff] %v115_v45 }
  0x4f   :  { %v130_v49 = vadd.f32 %v111_v48, %v110_v47 }
  0x51   :  { %132 = vst [vmem:[#allocation7 + $0x18] sm:$0xff] %v130_v49 }
  0x52   :  { %226 = shalt.err (!%p223_p6)
}
  0x53   :  { %s227_s10 = scalar_lea.hbm %s310_s2, 512 }
  0x54   :  { %p228_p7 = scmp.ne.s32.totalorder %s310_s2, %s227_s10  ;;  %p231_p8 = scmp.lt.u32.totalorder %s227_s10, %s310_s2 }
  0x56   :  { %p233_p9 = pnand %p231_p8, %p228_p7 }
  0x58   :  { %236 = shalt.err (!%p233_p9)
}
  0x59   :  { %144 = dma.vmem_to_hbm [thread:$0]  %s139_s6, 512, %s310_s2, [#allocation4], %s244_s19, %s244_s19, %s245_s20  }
  0x5a   :  { %241 = dma.done.wait [#allocation4], 512  }
  0x5b   :  { %242 = vsyncadd [#allocation4], 4294966784 }
  0x5c   :  { %148 = vsyncpa [#allocation3], 1 }
  0x5d   :  { %149 = vsyncpa [#allocation6], 1 }
  0x5e   :  { %150 = vsyncpa [#allocation4], 1 }

</bundles_post_ra>
